<compile_context>
chip_gen: v6e
topology: v6e:2x2x1
jax: 0.10.0
libtpu: 0.0.40
codegen_flags: <defaults>
</compile_context>

<pallas_src>
import jax
import jax.numpy as jnp
from jax.experimental import pallas as pl
from jax.experimental.pallas import tpu as pltpu


# ---------------------------------------------------------------------------
# Helpers
# ---------------------------------------------------------------------------
def _round_up(x, m):
    return ((x + m - 1) // m) * m


def _sublane(dtype):
    # Minimum sublane granularity for a packed output tile of this dtype.
    return {4: 8, 2: 16, 1: 32}.get(jnp.dtype(dtype).itemsize, 8)


# ---------------------------------------------------------------------------
# Kernels
# ---------------------------------------------------------------------------
def _make_avg_kernel(seq_len, seq_tile, need_seq_mask):
    """avg pooling kernel; seq_len / seq_tile / need_seq_mask are static."""

    def kernel(mask_ref, h_ref, o_ref, num_acc, den_acc):
        # mask_ref: (TB, TS) f32   h_ref: (TB, TS, H)   o_ref: (TB, H)
        # num_acc:  (TB, H) f32 scratch, den_acc: (TB, 1) f32 scratch
        s = pl.program_id(1)

        @pl.when(s == 0)
        def _():
            num_acc[...] = jnp.zeros_like(num_acc)
            den_acc[...] = jnp.zeros_like(den_acc)

        m = mask_ref[...]                                 # f32 (TB, TS)
        h = h_ref[...].astype(jnp.float32)                # (TB, TS, H)

        if need_seq_mask:
            # Last seq tile overruns S: zero both the mask and the product so
            # out-of-bounds garbage (possibly inf/NaN) cannot poison the sums.
            col = jax.lax.broadcasted_iota(jnp.int32, m.shape, 1) + s * seq_tile
            valid = col < seq_len
            m = jnp.where(valid, m, 0.0)
            masked = jnp.where(valid[:, :, None], h * m[:, :, None], 0.0)
        else:
            masked = h * m[:, :, None]

        num_acc[...] += jnp.sum(masked, axis=1)                        # (TB, H)
        den_acc[...] += jnp.sum(m, axis=1, keepdims=True)              # (TB, 1)

        @pl.when(s == pl.num_programs(1) - 1)
        def _():
            # Exact divide: runs once per batch tile, off the hot seq loop.
            # NOTE: all-zero mask rows yield inf/NaN, same as the PyTorch module.
            o_ref[...] = (num_acc[...] / den_acc[...]).astype(o_ref.dtype)

    return kernel


def _cls_pool_kernel(h_ref, o_ref):
    # h_ref: (TB, H)  (seq dim squeezed -> only token 0 was DMA'd)
    o_ref[...] = h_ref[...].astype(o_ref.dtype)


# ---------------------------------------------------------------------------
# Wrapper
# ---------------------------------------------------------------------------
def rec_roberta_pooler(attention_mask, hidden_states, pooler_type="avg",
                       *, tb=None, ts=None):
    """JAX/Pallas equivalent of RecRobertaPooler.forward.

    attention_mask: (B, S) float / int / bool
    hidden_states : (B, S, H)
    returns       : (B, H)
    tb / ts: optional tile overrides (ts must be a multiple of 128 when < S).
    """
    B, S, H = hidden_states.shape
    dtype = hidden_states.dtype
    itemsize = jnp.dtype(dtype).itemsize
    sub = _sublane(dtype)

    if pooler_type == "avg":
        # --- batch tile (dtype-aware, never pads hidden_states) -------------
        TB = tb if tb is not None else max(16, sub)
        TB = min(_round_up(TB, sub), _round_up(B, sub))
        # v7x megacore: give the "parallel" batch axis >= 2 tiles when the
        # batch is large enough to split.
        if pl.cdiv(B, TB) < 2:
            half = _round_up(pl.cdiv(B, 2), sub)
            if sub <= half < TB:
                TB = half

        # --- seq tile: ~8 MiB hidden block per buffer -----------------------
        target_bytes = 8 * 1024 * 1024
        ts_cap = max(128, (target_bytes // max(1, TB * H * itemsize)) // 128 * 128)
        if ts is not None:
            ts_cap = ts
        TS = S if S <= ts_cap else ts_cap
        need_seq_mask = (S % TS) != 0

        mask = attention_mask
        if mask.dtype != jnp.float32:
            mask = mask.astype(jnp.float32)   # cheap [B,S] cast; 32-bit-friendly tiles

        # Pad only the (tiny) output along batch so every output block is full;
        # the [B,S,H] input is never copied.
        B_p = _round_up(B, TB)
        grid = (B_p // TB, pl.cdiv(S, TS))

        # VMEM budget from actual tile sizes (double-buffered inputs), capped
        # at 48 MiB so we never claim v7x's entire 64 MiB.
        hidden_blk = TB * TS * H * itemsize
        mask_blk = TB * TS * 4
        out_blk = TB * H * itemsize
        scratch_b = TB * H * 4 + TB * 128 * 4
        vmem_limit = int(min(
            48 << 20,
            max(16 << 20,
                2 * (hidden_blk + mask_blk) + 2 * out_blk + scratch_b + (4 << 20))))

        kernel = _make_avg_kernel(S, TS, need_seq_mask)
        out = pl.pallas_call(
            kernel,
            out_shape=jax.ShapeDtypeStruct((B_p, H), dtype),
            grid_spec=pltpu.PrefetchScalarGridSpec(
                num_scalar_prefetch=0,
                grid=grid,
                in_specs=[
                    pl.BlockSpec((TB, TS), lambda b, s: (b, s)),
                    pl.BlockSpec((TB, TS, H), lambda b, s: (b, s, 0)),
                ],
                # Output index independent of seq axis -> stays VMEM-resident
                # across the reduction; written back once per batch tile.
                out_specs=pl.BlockSpec((TB, H), lambda b, s: (b, 0)),
                scratch_shapes=[
                    pltpu.VMEM((TB, H), jnp.float32),   # numerator accumulator
                    pltpu.VMEM((TB, 1), jnp.float32),   # denominator accumulator
                ],
            ),
            compiler_params=pltpu.CompilerParams(
                dimension_semantics=("parallel", "arbitrary"),
                vmem_limit_bytes=vmem_limit,
            ),
        )(mask, hidden_states)
        return out[:B]

    elif pooler_type == "cls":
        # Only token 0 of each batch tile is DMA'd: (TB, 1, H) slabs with the
        # seq dim squeezed; hidden_states is never padded or fully streamed.
        TB = tb if tb is not None else min(256, _round_up(B, sub))
        TB = min(_round_up(TB, sub), _round_up(B, sub))
        B_p = _round_up(B, TB)

        out = pl.pallas_call(
            _cls_pool_kernel,
            out_shape=jax.ShapeDtypeStruct((B_p, H), dtype),
            grid_spec=pltpu.PrefetchScalarGridSpec(
                num_scalar_prefetch=0,
                grid=(B_p // TB,),
                in_specs=[
                    pl.BlockSpec((TB, pl.Squeezed(), H), lambda b: (b, 0, 0)),
                ],
                out_specs=pl.BlockSpec((TB, H), lambda b: (b, 0)),
            ),
            compiler_params=pltpu.CompilerParams(
                dimension_semantics=("parallel",),
            ),
        )(hidden_states)
        return out[:B]

    else:
        raise NotImplementedError(pooler_type)


# ---------------------------------------------------------------------------
# Pure-JAX reference (for correctness check)
# ---------------------------------------------------------------------------
def _ref_pooler(attention_mask, hidden_states, pooler_type):
    if pooler_type == "cls":
        return hidden_states[:, 0]
    elif pooler_type == "avg":
        m = attention_mask.astype(hidden_states.dtype)
        num = jnp.sum(hidden_states * m[..., None], axis=1)
        den = jnp.sum(m, axis=-1)[..., None]
        return num / den
    raise NotImplementedError(pooler_type)


if __name__ == "__main__":
    # RecRobertaPooler has no learnable parameters (only a pooler_type config).
    key = jax.random.PRNGKey(0)
    k1, k2 = jax.random.split(key)

    # ---- test 1: small shapes, single seq tile -----------------------------
    B, S, H = 2, 8, 32
    hidden_states = jax.random.normal(k1, (B, S, H), dtype=jnp.float32)
    lengths = jnp.array([5, 8], dtype=jnp.int32)
    attention_mask = (jnp.arange(S)[None, :] < lengths[:, None]).astype(jnp.float32)

    out_avg = jax.block_until_ready(
        rec_roberta_pooler(attention_mask, hidden_states, pooler_type="avg"))
    ref_avg = _ref_pooler(attention_mask, hidden_states, "avg")
    assert out_avg.shape == (B, H)
    assert jnp.allclose(out_avg, ref_avg, atol=1e-5, rtol=1e-5), "avg mismatch"

    out_cls = jax.block_until_ready(
        rec_roberta_pooler(attention_mask, hidden_states, pooler_type="cls"))
    ref_cls = _ref_pooler(attention_mask, hidden_states, "cls")
    assert out_cls.shape == (B, H)
    assert jnp.allclose(out_cls, ref_cls, atol=1e-6, rtol=1e-6), "cls mismatch"

    # ---- test 2: multi seq tile with remainder (exercises iota seq-mask) ---
    B2, S2, H2 = 2, 200, 32
    hidden2 = jax.random.normal(k2, (B2, S2, H2), dtype=jnp.float32)
    lengths2 = jnp.array([137, 200], dtype=jnp.int32)
    mask2 = (jnp.arange(S2)[None, :] < lengths2[:, None]).astype(jnp.float32)

    out2 = jax.block_until_ready(
        rec_roberta_pooler(mask2, hidden2, pooler_type="avg", ts=128))
    ref2 = _ref_pooler(mask2, hidden2, "avg")
    assert out2.shape == (B2, H2)
    assert jnp.allclose(out2, ref2, atol=1e-4, rtol=1e-4), "avg (remainder) mismatch"

    print("KERNEL_OK")
</pallas_src>

<mosaic_0001>
module attributes {stable_mosaic.version = 11 : i64} {
  func.func @kernel(%arg0: i32, %arg1: i32, %arg2: memref<8x8xf32, #tpu.memory_space<vmem>>, %arg3: memref<8x8x32xf32, #tpu.memory_space<vmem>>, %arg4: memref<8x32xf32, #tpu.memory_space<vmem>>, %arg5: memref<8x32xf32, #tpu.memory_space<vmem>>, %arg6: memref<8x1xf32, #tpu.memory_space<vmem>>) attributes {dimension_semantics = [#tpu.dimension_semantics<parallel>, #tpu.dimension_semantics<arbitrary>], iteration_bounds = array<i64: 1, 1>, scalar_prefetch = 0 : i64, scratch_operands = 2 : i64, tpu.core_type = #tpu.core_type<tc>, window_params = [{transform_indices = @transform_0, window_bounds = array<i64: 8, 8>}, {transform_indices = @transform_1, window_bounds = array<i64: 8, 8, 32>}, {transform_indices = @transform_2, window_bounds = array<i64: 8, 32>}]} {
    %c0_i32 = arith.constant 0 : i32
    %0 = arith.cmpi eq, %arg1, %c0_i32 : i32
    %1 = arith.extui %0 : i1 to i32
    %c0_i32_0 = arith.constant 0 : i32
    %2 = arith.cmpi ne, %1, %c0_i32_0 : i32
    scf.if %2 {
      %cst_16 = arith.constant 0.000000e+00 : f32
      %20 = vector.broadcast %cst_16 : f32 to vector<8x32xf32>
      %c0_17 = arith.constant 0 : index
      %c0_18 = arith.constant 0 : index
      %21 = vector.load %arg5[%c0_17, %c0_18] : memref<8x32xf32, #tpu.memory_space<vmem>>, vector<8x32xf32>
      tpu.vector_store %arg5[%c0_17, %c0_18], %20 {strides = array<i32>} : memref<8x32xf32, #tpu.memory_space<vmem>>, vector<8x32xf32>,
      %cst_19 = arith.constant 0.000000e+00 : f32
      %22 = vector.broadcast %cst_19 : f32 to vector<8x1xf32>
      %c0_20 = arith.constant 0 : index
      %c0_21 = arith.constant 0 : index
      %23 = vector.load %arg6[%c0_20, %c0_21] : memref<8x1xf32, #tpu.memory_space<vmem>>, vector<8x1xf32>
      tpu.vector_store %arg6[%c0_20, %c0_21], %22 {strides = array<i32>} : memref<8x1xf32, #tpu.memory_space<vmem>>, vector<8x1xf32>,
    } else {
    }
    %c0 = arith.constant 0 : index
    %c0_1 = arith.constant 0 : index
    %3 = vector.load %arg2[%c0, %c0_1] : memref<8x8xf32, #tpu.memory_space<vmem>>, vector<8x8xf32>
    %c0_2 = arith.constant 0 : index
    %c0_3 = arith.constant 0 : index
    %c0_4 = arith.constant 0 : index
    %4 = vector.load %arg3[%c0_2, %c0_3, %c0_4] : memref<8x8x32xf32, #tpu.memory_space<vmem>>, vector<8x8x32xf32>
    %5 = vector.shape_cast %3 : vector<8x8xf32> to vector<8x8x1xf32>
    %6 = vector.broadcast %5 : vector<8x8x1xf32> to vector<8x8x32xf32>
    %7 = arith.mulf %4, %6 : vector<8x8x32xf32>
    %c0_5 = arith.constant 0 : index
    %c0_6 = arith.constant 0 : index
    %8 = vector.load %arg5[%c0_5, %c0_6] : memref<8x32xf32, #tpu.memory_space<vmem>>, vector<8x32xf32>
    %cst = arith.constant dense<0.000000e+00> : vector<8x32xf32>
    %9 = vector.multi_reduction <add>, %7, %cst [1] : vector<8x8x32xf32> to vector<8x32xf32>
    %10 = arith.addf %8, %9 : vector<8x32xf32>
    %c0_7 = arith.constant 0 : index
    %c0_8 = arith.constant 0 : index
    %11 = vector.load %arg5[%c0_7, %c0_8] : memref<8x32xf32, #tpu.memory_space<vmem>>, vector<8x32xf32>
    tpu.vector_store %arg5[%c0_7, %c0_8], %10 {strides = array<i32>} : memref<8x32xf32, #tpu.memory_space<vmem>>, vector<8x32xf32>,
    %c0_9 = arith.constant 0 : index
    %c0_10 = arith.constant 0 : index
    %12 = vector.load %arg6[%c0_9, %c0_10] : memref<8x1xf32, #tpu.memory_space<vmem>>, vector<8x1xf32>
    %cst_11 = arith.constant dense<0.000000e+00> : vector<8xf32>
    %13 = vector.multi_reduction <add>, %3, %cst_11 [1] : vector<8x8xf32> to vector<8xf32>
    %14 = vector.shape_cast %13 : vector<8xf32> to vector<8x1xf32>
    %15 = arith.addf %12, %14 : vector<8x1xf32>
    %c0_12 = arith.constant 0 : index
    %c0_13 = arith.constant 0 : index
    %16 = vector.load %arg6[%c0_12, %c0_13] : memref<8x1xf32, #tpu.memory_space<vmem>>, vector<8x1xf32>
    tpu.vector_store %arg6[%c0_12, %c0_13], %15 {strides = array<i32>} : memref<8x1xf32, #tpu.memory_space<vmem>>, vector<8x1xf32>,
    %c0_i32_14 = arith.constant 0 : i32
    %17 = arith.cmpi eq, %arg1, %c0_i32_14 : i32
    %18 = arith.extui %17 : i1 to i32
    %c0_i32_15 = arith.constant 0 : i32
    %19 = arith.cmpi ne, %18, %c0_i32_15 : i32
    scf.if %19 {
      %c0_16 = arith.constant 0 : index
      %c0_17 = arith.constant 0 : index
      %20 = vector.load %arg5[%c0_16, %c0_17] : memref<8x32xf32, #tpu.memory_space<vmem>>, vector<8x32xf32>
      %c0_18 = arith.constant 0 : index
      %c0_19 = arith.constant 0 : index
      %21 = vector.load %arg6[%c0_18, %c0_19] : memref<8x1xf32, #tpu.memory_space<vmem>>, vector<8x1xf32>
      %22 = vector.broadcast %21 : vector<8x1xf32> to vector<8x32xf32>
      %23 = arith.divf %20, %22 : vector<8x32xf32>
      %c0_20 = arith.constant 0 : index
      %c0_21 = arith.constant 0 : index
      %24 = vector.load %arg4[%c0_20, %c0_21] : memref<8x32xf32, #tpu.memory_space<vmem>>, vector<8x32xf32>
      tpu.vector_store %arg4[%c0_20, %c0_21], %23 {strides = array<i32>} : memref<8x32xf32, #tpu.memory_space<vmem>>, vector<8x32xf32>,
    } else {
    }
    return
  }
  func.func @transform_0(%arg0: i32, %arg1: i32) -> (i32, i32) {
    %c0_i32 = arith.constant 0 : i32
    return %arg0, %arg1 : i32, i32
  }
  func.func @transform_1(%arg0: i32, %arg1: i32) -> (i32, i32, i32) {
    %c0_i32 = arith.constant 0 : i32
    %c0_i32_0 = arith.constant 0 : i32
    return %arg0, %arg1, %c0_i32 : i32, i32, i32
  }
  func.func @transform_2(%arg0: i32, %arg1: i32) -> (i32, i32) {
    %c0_i32 = arith.constant 0 : i32
    %c0_i32_0 = arith.constant 0 : i32
    return %arg0, %c0_i32 : i32, i32
  }
}

</mosaic_0001>

<bundles_post_ra>
// kernel: tpu_custom_call.1
= control target key start
LH: loop header
LB: loop body
LE: loop exit
PB: predicated region body
PF: predicated region fallthrough
CT: control target
= control target key end

     0   :  { %7 = vsyncpa [#allocation5], 0  ;;  %s365_s0 = inlined_call_operand.hbm [shape: f32[2,8], index: 0, kind: input, shape index: {}]   ;;  %s366_s1 = inlined_call_operand.hbm [shape: f32[2,8,32], index: 1, kind: input, shape index: {}]   ;;  %s367_s2 = inlined_call_operand.hbm [shape: f32[8,32], index: 2, kind: output, shape index: {}]  }
   0x1   :  { %8 = vsyncpa [#allocation8], 0 }
   0x2   :  { %9 = vsyncpa [#allocation6], 0 }
   0x3   :  { %14 = vsyncadd [#allocation5], 96  ;;  %s319_s9 = smov [#allocation4]  }
   0x4   :  { %s15_s10 = sshll.u32 %s319_s9, 4  ;;  %s16_s10 = int_to_ptr.vmem [resolvable:$true] %s15_s10 }
   0x5   :  { %s261_s11 = scalar_lea.vmem %s16_s10, 32  ;;  %s265_s12 = scalar_lea.vmem %s16_s10, 128 }
   0x6   :  { %p262_p0 = scmp.ne.s32.totalorder %s16_s10, %s261_s11  ;;  %p266_p1 = scmp.lt.s32.totalorder %s16_s10, %s16_s10 }
   0x7   :  { %p267_p2 = scmp.lt.s32.totalorder %s265_s12, %s261_s11 }
   0x9   :  { %p268_p3 = por %p267_p2, %p266_p1 }
   0xb   :  { %p269_p4 = pnand %p268_p3, %p262_p0 }
   0xd   :  { %272 = shalt.err (!%p269_p4)
}
   0xe   :  { %s320_s13 = smov 32   ;;  %s321_s14 = smov 2  }
   0xf   :  { %21 = dma.hbm_to_vmem [thread:$0]  %s365_s0, 32, %s16_s10, [#allocation5], %s320_s13, %s320_s13, %s321_s14  }
  0x10   :  { %26 = vsyncadd [#allocation8], 768  ;;  %s322_s17 = smov [#allocation7]  }
  0x11   :  { %s27_s18 = sshll.u32 %s322_s17, 4  ;;  %s28_s18 = int_to_ptr.vmem [resolvable:$true] %s27_s18 }
  0x12   :  { %s281_s19 = scalar_lea.vmem %s28_s18, 256  ;;  %s285_s20 = scalar_lea.vmem %s28_s18, 1024 }
  0x13   :  { %p282_p5 = scmp.ne.s32.totalorder %s28_s18, %s281_s19  ;;  %p286_p6 = scmp.lt.s32.totalorder %s28_s18, %s28_s18 }
  0x14   :  { %p287_p7 = scmp.lt.s32.totalorder %s285_s20, %s281_s19 }
  0x16   :  { %p288_p8 = por %p287_p7, %p286_p6 }
  0x18   :  { %p289_p9 = pnand %p288_p8, %p282_p5 }
  0x1a   :  { %292 = shalt.err (!%p289_p9)
}
  0x1b   :  { %s323_s21 = smov 128   ;;  %s324_s22 = smov 8  }
  0x1c   :  { %33 = dma.hbm_to_vmem [thread:$0]  %s366_s1, 256, %s28_s18, [#allocation8], %s323_s21, %s323_s21, %s324_s22  }
  0x1d   :  { %313 = dma.done.wait [#allocation5], 128  }
  0x1e   :  { %314 = vsyncadd [#allocation5], 4294967168 }
  0x1f   :  { %315 = dma.done.wait [#allocation8], 1024  }
  0x20   :  { %316 = vsyncadd [#allocation8], 4294966272  ;;  %v57_v0 = vlaneseq  ;;  %vm44_vm0 = vcmask 261120   ;;  %vm46_vm1 = vcmask 7168   ;;  %v325_v1 = vmov 0.0   ;;  %v48_v5 = vld [vmem:[#allocation4] sm:$0xff] }
  0x21   :  { %45 = vst.msk [vmem:[#allocation2] sm:$0xff] %vm44_vm0, %v325_v1  ;;  %vm205_vm2 = vcmask 64512   ;;  %v326_v16 = vmov 0   ;;  %v50_v24 = vld [vmem:[#allocation7 + $0x8] sm:$0xff]  ;;  %v51_v26 = vld [vmem:[#allocation7 + $0x10] sm:$0xff]  ;;  %v52_v27 = vld [vmem:[#allocation7 + $0x18] sm:$0xff] }
  0x22   :  { %v58_v2 = vshrl.u32 %v57_v0, 7  ;;  %47 = vst.msk [vmem:[#allocation3] sm:$0xff] %vm46_vm1, %v325_v1  ;;  %v206_v6 = vsel %vm205_vm2, %v48_v5, 0.0  ;;  %250 = vset.pattern.permute.xlu0 %v326_v16  ;;  %v53_v29 = vld [vmem:[#allocation7 + $0x20] sm:$0xff]  ;;  %v54_v34 = vld [vmem:[#allocation7 + $0x28] sm:$0xff]  ;;  %v55_v42 = vld [vmem:[#allocation7 + $0x30] sm:$0xff] }
  0x23   :  { %207 = vadd.xlane.f32.xlu0 %v206_v6  ;;  %v56_v53 = vld [vmem:[#allocation7 + $0x38] sm:$0xff]  ;;  %v49_v58 = vld [vmem:[#allocation7] sm:$0xff]  ;;  %vm187_vm3 = vcmask 1041409   ;;  %vm189_vm4 = vcmask 1042434   ;;  %vm191_vm5 = vcmask 1043459   ;;  %vm193_vm6 = vcmask 1044484  }
  0x24   :  { %v66_v3 = vsub.s32 1, %v58_v2  ;;  %v73_v4 = vsub.s32 2, %v58_v2  ;;  %v80_v9 = vsub.s32 3, %v58_v2  ;;  %v87_v11 = vsub.s32 4, %v58_v2  ;;  %s327_s0 = smov [#allocation9]  }
  0x25   :  { %v94_v13 = vsub.s32 5, %v58_v2  ;;  %v101_v15 = vsub.s32 6, %v58_v2  ;;  %v59_v17 = vsub.s32 0, %v58_v2  ;;  %v108_v19 = vsub.s32 7, %v58_v2  ;;  %s231_s1 = sshll.u32 %s327_s0, 4  ;;  %s232_s1 = int_to_ptr.vmem [resolvable:$true] %s231_s1 }
  0x26   :  { %v67_v7 = vrot.slane %v48_v5, %v66_v3  ;;  %v74_v8 = vrot.slane %v48_v5, %v73_v4  ;;  %v81_v10 = vrot.slane %v48_v5, %v80_v9  ;;  %v88_v12 = vrot.slane %v48_v5, %v87_v11  ;;  %s293_s25 = scalar_lea.vmem %s232_s1, 128  ;;  %p298_p11 = scmp.lt.s32.totalorder %s232_s1, %s232_s1 }
  0x27   :  { %v95_v14 = vrot.slane %v48_v5, %v94_v13  ;;  %v102_v18 = vrot.slane %v48_v5, %v101_v15  ;;  %v60_v20 = vrot.slane %v48_v5, %v59_v17  ;;  %v109_v21 = vrot.slane %v48_v5, %v108_v19  ;;  %p294_p10 = scmp.ne.s32.totalorder %s232_s1, %s293_s25  ;;  %p299_p12 = scmp.lt.s32.totalorder %s293_s25, %s293_s25 }
  0x28   :  { %69 = vbcast.lane.b32.xlu1 %v67_v7, 256  ;;  %vm195_vm7 = vcmask 1045509   ;;  %vm197_vm8 = vcmask 1046534   ;;  %vm199_vm9 = vcmask 1047559  }
  0x29   :  { %v204_v45 = vld [vmem:[#allocation3] sm:$0xff]  ;;  %p300_p13 = por %p299_p12, %p298_p11 }
  0x2b   :  { %p301_p0 = pnand %p300_p13, %p294_p10 }
  0x2c   :  { %76 = vbcast.lane.b32.xlu1 %v74_v8, 256 }
  0x30   :  { %83 = vbcast.lane.b32.xlu1 %v81_v10, 256 }
  0x34   :  { %90 = vbcast.lane.b32.xlu1 %v88_v12, 256 }
  0x38   :  { %97 = vbcast.lane.b32.xlu1 %v95_v14, 256 }
  0x39   :  { %62 = vbcast.lane.b32.xlu0 %v60_v20, 256 }
  0x3c   :  { %104 = vbcast.lane.b32.xlu1 %v102_v18, 256 }
  0x40   :  { %111 = vbcast.lane.b32.xlu1 %v109_v21, 256 }
  0x9a   :  { %v70_v22 = vpop.permute.xlu1 %69 }
  0x9b   :  { %v114_v28 = vmul.f32 %v70_v22, %v50_v24 }
  0x9d   :  { %v130_v35 = vsel %vm44_vm0, %v114_v28, 0.0 }
  0x9e   :  { %v77_v23 = vpop.permute.xlu1 %76  ;;  %v131_v40 = vrot.slane %v130_v35, 4 }
  0x9f   :  { %v115_v30 = vmul.f32 %v77_v23, %v51_v26 }
  0xa0   :  { %v132_v51 = vadd.f32 %v131_v40, %v130_v35 }
  0xa1   :  { %v137_v36 = vsel %vm44_vm0, %v115_v30, 0.0 }
  0xa2   :  { %v84_v25 = vpop.permute.xlu1 %83  ;;  %v138_v43 = vrot.slane %v137_v36, 4  ;;  %v133_v63 = vrot.slane %v132_v51, 2 }
  0xa3   :  { %v116_v32 = vmul.f32 %v84_v25, %v52_v27 }
  0xa4   :  { %v139_v55 = vadd.f32 %v138_v43, %v137_v36  ;;  %v134_v10 = vadd.f32 %v133_v63, %v132_v51 }
  0xa5   :  { %v144_v38 = vsel %vm44_vm0, %v116_v32, 0.0 }
  0xa6   :  { %v91_v31 = vpop.permute.xlu1 %90  ;;  %v145_v46 = vrot.slane %v144_v38, 4  ;;  %v140_v2 = vrot.slane %v139_v55, 2  ;;  %v135_v21 = vrot.slane %v134_v10, 1 }
  0xa7   :  { %v117_v33 = vmul.f32 %v91_v31, %v53_v29 }
  0xa8   :  { %v146_v57 = vadd.f32 %v145_v46, %v144_v38  ;;  %v141_v14 = vadd.f32 %v140_v2, %v139_v55  ;;  %v136_v30 = vadd.f32 %v135_v21, %v134_v10 }
  0xa9   :  { %v151_v41 = vsel %vm44_vm0, %v117_v33, 0.0 }
  0xaa   :  { %v98_v37 = vpop.permute.xlu1 %97  ;;  %v152_v48 = vrot.slane %v151_v41, 4  ;;  %v147_v6 = vrot.slane %v146_v57, 2  ;;  %v142_v24 = vrot.slane %v141_v14, 1 }
  0xab   :  { %v118_v39 = vmul.f32 %v98_v37, %v54_v34 }
  0xac   :  { %v208_v50 = vpop.xlane.xlu0 %207  ;;  %v153_v61 = vadd.f32 %v152_v48, %v151_v41  ;;  %v148_v17 = vadd.f32 %v147_v6, %v146_v57  ;;  %v143_v33 = vadd.f32 %v142_v24, %v141_v14 }
  0xad   :  { %v158_v44 = vsel %vm44_vm0, %v118_v39, 0.0  ;;  %v209_v54 = vadd.f32 %v208_v50, %v204_v45 }
  0xae   :  { %v105_v47 = vpop.permute.xlu1 %104  ;;  %v159_v52 = vrot.slane %v158_v44, 4  ;;  %v154_v8 = vrot.slane %v153_v61, 2  ;;  %v149_v26 = vrot.slane %v148_v17, 1 }
  0xaf   :  { %v119_v49 = vmul.f32 %v105_v47, %v55_v42  ;;  %211 = vst.msk [vmem:[#allocation3] sm:$0xff] %vm46_vm1, %v209_v54  ;;  %v121_v47 = vld [vmem:[#allocation2] sm:$0xff] }
  0xb0   :  { %v160_v0 = vadd.f32 %v159_v52, %v158_v44  ;;  %v63_v1 = vpop.permute.xlu0 %62  ;;  %v155_v20 = vadd.f32 %v154_v8, %v153_v61  ;;  %v150_v35 = vadd.f32 %v149_v26, %v148_v17 }
  0xb1   :  { %v165_v56 = vsel %vm44_vm0, %v119_v49, 0.0  ;;  %v113_v3 = vmul.f32 %v63_v1, %v49_v58 }
  0xb2   :  { %v166_v59 = vrot.slane %v165_v56, 4  ;;  %v112_v60 = vpop.permute.xlu1 %111  ;;  %v161_v11 = vrot.slane %v160_v0, 2  ;;  %v156_v29 = vrot.slane %v155_v20, 1 }
  0xb3   :  { %v120_v62 = vmul.f32 %v112_v60, %v56_v53  ;;  %v123_v9 = vsel %vm44_vm0, %v113_v3, 0.0 }
  0xb4   :  { %v167_v4 = vadd.f32 %v166_v59, %v165_v56  ;;  %v124_v12 = vrot.slane %v123_v9, 4  ;;  %v162_v22 = vadd.f32 %v161_v11, %v160_v0  ;;  %v157_v38 = vadd.f32 %v156_v29, %v155_v20 }
  0xb5   :  { %v172_v5 = vsel %vm44_vm0, %v120_v62, 0.0 }
  0xb6   :  { %v173_v7 = vrot.slane %v172_v5, 4  ;;  %v168_v15 = vrot.slane %v167_v4, 2  ;;  %v216_v16 = vld [vmem:[#allocation3] sm:$0xff]  ;;  %v125_v18 = vadd.f32 %v124_v12, %v123_v9  ;;  %v163_v31 = vrot.slane %v162_v22, 1 }
  0xb7   :  { %219 = vperm.xlu0 %250, %v216_v16  }
  0xb8   :  { %v174_v13 = vadd.f32 %v173_v7, %v172_v5  ;;  %v126_v23 = vrot.slane %v125_v18, 2  ;;  %v169_v25 = vadd.f32 %v168_v15, %v167_v4  ;;  %v164_v39 = vadd.f32 %v163_v31, %v162_v22 }
  0xba   :  { %v175_v19 = vrot.slane %v174_v13, 2  ;;  %v127_v27 = vadd.f32 %v126_v23, %v125_v18  ;;  %v170_v34 = vrot.slane %v169_v25, 1 }
  0xbc   :  { %v176_v28 = vadd.f32 %v175_v19, %v174_v13  ;;  %v128_v32 = vrot.slane %v127_v27, 1  ;;  %v171_v42 = vadd.f32 %v170_v34, %v169_v25 }
  0xbe   :  { %v129_v36 = vadd.f32 %v128_v32, %v127_v27  ;;  %v177_v37 = vrot.slane %v176_v28, 1 }
  0xc0   :  { %v188_v40 = vsel %vm187_vm3, %v136_v30, %v129_v36  ;;  %v178_v44 = vadd.f32 %v177_v37, %v176_v28 }
  0xc1   :  { %v190_v41 = vsel %vm189_vm4, %v143_v33, %v188_v40 }
  0xc2   :  { %v192_v43 = vsel %vm191_vm5, %v150_v35, %v190_v41 }
  0xc3   :  { %v194_v45 = vsel %vm193_vm6, %v157_v38, %v192_v43 }
  0xc4   :  { %v196_v46 = vsel %vm195_vm7, %v164_v39, %v194_v45 }
  0xc5   :  { %v198_v48 = vsel %vm197_vm8, %v171_v42, %v196_v46 }
  0xc6   :  { %v200_v49 = vsel %vm199_vm9, %v178_v44, %v198_v48 }
  0xc7   :  { %v202_v50 = vadd.f32 %v200_v49, %v121_v47 }
  0xc9   :  { %203 = vst.msk [vmem:[#allocation2] sm:$0xff] %vm44_vm0, %v202_v50 }
  0xd0   :  { %v215_v53 = vld [vmem:[#allocation2] sm:$0xff] }
 0x132   :  { %v220_v51 = vpop.permute.xlu0 %219 }
 0x133   :  { %251 = vrcp.f32 %v220_v51 }
 0x140   :  { %v252_v52 = vpop.eup %251 }
 0x141   :  { %v223_v54 = vmul.f32 %v252_v52, %v215_v53 }
 0x143   :  { %224 = vst.msk [vmem:[#allocation9] sm:$0xff] %vm44_vm0, %v223_v54 }
 0x144   :  { %304 = shalt.err (!%p301_p0)
}
 0x145   :  { %234 = dma.vmem_to_hbm [thread:$0]  %s232_s1, 128, %s367_s2, [#allocation6]  }
 0x146   :  { %317 = dma.done.wait [#allocation6], 128  }
 0x147   :  { %318 = vsyncadd [#allocation6], 4294967168 }
 0x148   :  { %238 = vsyncpa [#allocation5], 1 }
 0x149   :  { %239 = vsyncpa [#allocation8], 1 }
 0x14a   :  { %240 = vsyncpa [#allocation6], 1 }

</bundles_post_ra>
